<compile_context>
chip_gen: v5e
topology: v5e:2x2
jax: 0.10.0
libtpu: 0.0.40
codegen_flags: <defaults>
</compile_context>

<pallas_src>
import functools

import jax
import jax.numpy as jnp
from jax.experimental import pallas as pl
from jax.experimental.pallas import tpu as pltpu

# Streaming budget for the double-buffered x/out tiles: 12 MiB leaves headroom
# under v5e's 16 MiB scoped-VMEM default (v6e: 32 MiB, v7x: 32/64 MiB).
_STREAM_VMEM_BUDGET = 12 * 1024 * 1024
# Default cap on original batch rows per grid step.
_DEFAULT_BLOCK_B = 8192
# Once the folded batch has at least this many rows, force >=2 grid steps so
# the "parallel" axis can use both TensorCores on megacore parts (v7x); on
# single-core parts the extra ~0.35us step is noise at this size.
_MIN_FOLDED_ROWS_FOR_SPLIT = 1024

# Single-buffer the VMEM-resident parameter blocks when this JAX exposes
# BlockSpec.pipeline_mode (constant index_map -> second buffer is wasted VMEM).
_RESIDENT_KW = {}
if hasattr(pl, "Buffered"):
    try:
        pl.BlockSpec((8, 128), lambda i: (0, 0), pipeline_mode=pl.Buffered(1))
        _RESIDENT_KW = {"pipeline_mode": pl.Buffered(1)}
    except Exception:
        _RESIDENT_KW = {}


def _round_up(x, m):
    return -(-x // m) * m


def _resident_spec(block_shape):
    """BlockSpec for a parameter that stays VMEM-resident across the grid."""
    return pl.BlockSpec(block_shape, lambda i: (0,) * len(block_shape),
                        **_RESIDENT_KW)


def _spk_enc_kernel(x_ref, w1_ref, wsq_ref, bias_ref, o_ref):
    """Fused hot path: 4 MXU matmuls (f32 accumulation) + ReLUs + residual.

    Shapes are the lane-folded ones: x (tb_f, g*E), w1 (g*E, g*E_out),
    wsq (3, g*E_out, g*E_out), bias (4, g*E_out), out (tb_f, g*E_out).
    """
    op_dtype = w1_ref.dtype
    x = x_ref[...].astype(op_dtype)
    b = bias_ref[...].astype(jnp.float32)           # (4, g*E_out), tiny

    # Conv1d(E -> E_out, k=1) + ReLU
    h0 = jnp.dot(x, w1_ref[...], preferred_element_type=jnp.float32) + b[0:1, :]
    h0 = jnp.maximum(h0, 0.0)

    # ResidualConvLayer: h0 + conv2(relu(conv1(h0)))
    r1 = jnp.dot(h0.astype(op_dtype), wsq_ref[0],
                 preferred_element_type=jnp.float32) + b[1:2, :]
    r1 = jnp.maximum(r1, 0.0)
    r2 = jnp.dot(r1.astype(op_dtype), wsq_ref[1],
                 preferred_element_type=jnp.float32) + b[2:3, :]
    res = h0 + r2

    # ReLU + final Conv1d(E_out -> E_out, k=1)
    h2 = jnp.maximum(res, 0.0)
    out = jnp.dot(h2.astype(op_dtype), wsq_ref[2],
                  preferred_element_type=jnp.float32) + b[3:4, :]

    o_ref[...] = out.astype(o_ref.dtype)


@functools.partial(jax.jit, static_argnames=("fold", "block_b"))
def _spk_enc_call(x, w1, wsq, bias, *, fold, block_b):
    B, E = x.shape
    g = fold
    gE = g * E
    gEo = wsq.shape[-1]                   # = g * E_out
    E_out = gEo // g
    assert w1.shape == (gE, gEo) and bias.shape == (4, gEo)

    isz = jnp.dtype(x.dtype).itemsize
    w_bytes = (w1.size * w1.dtype.itemsize + wsq.size * wsq.dtype.itemsize
               + bias.size * bias.dtype.itemsize)

    # ---- Batch-tile selection (in folded rows), VMEM-budgeted. -------------
    n_f = pl.cdiv(B, g)                               # folded rows needed
    row_bytes = 2 * (gE + gEo) * isz                  # double-buffered x+out / row
    avail = max(_STREAM_VMEM_BUDGET - 2 * w_bytes, row_bytes * 8)
    tb_f = min(max(block_b // g, 8), max(avail // row_bytes, 8))
    tb_f = max(8, (tb_f // 8) * 8)
    if n_f >= _MIN_FOLDED_ROWS_FOR_SPLIT:             # v7x megacore: >=2 steps
        tb_f = min(tb_f, _round_up(pl.cdiv(n_f, 2), 8))
    if n_f <= tb_f:
        tb_f = n_f                                    # single block == full dim
    grid_b = pl.cdiv(n_f, tb_f)
    n_f_pad = grid_b * tb_f
    b_pad = n_f_pad * g

    # Pad only when the batch is not fold/tile aligned; aligned batches are a
    # zero-copy path and any pad is at most ~one tile of rows.
    if b_pad != B:
        x = jnp.pad(x, ((0, b_pad - B), (0, 0)))
    x_f = x.reshape(n_f_pad, gE)                      # row-major lane-fold view

    cost = pl.CostEstimate(
        flops=2 * n_f_pad * (gE * gEo + 3 * gEo * gEo),
        transcendentals=0,
        bytes_accessed=n_f_pad * (gE + gEo) * isz + w_bytes,
    )

    out_f = pl.pallas_call(
        _spk_enc_kernel,
        out_shape=jax.ShapeDtypeStruct((n_f_pad, gEo), x.dtype),
        grid=(grid_b,),
        in_specs=[
            pl.BlockSpec((tb_f, gE), lambda i: (i, 0)),   # streamed activations
            _resident_spec((gE, gEo)),                    # VMEM-resident W1
            _resident_spec((3, gEo, gEo)),                # Wr1 / Wr2 / W3
            _resident_spec((4, gEo)),                     # biases
        ],
        out_specs=pl.BlockSpec((tb_f, gEo), lambda i: (i, 0)),
        compiler_params=pltpu.CompilerParams(
            dimension_semantics=("parallel",)),
        cost_estimate=cost,
    )(x_f, w1, wsq, bias)

    out2d = out_f.reshape(b_pad, E_out)               # undo lane fold (free view)
    if b_pad != B:
        out2d = out2d[:B]
    # (B, E_out, 1).transpose(-1, -2) == (B, 1, E_out)
    return out2d.reshape(B, 1, E_out)


def speaker_embedding_encoder(spk_embs, packed, *, block_b=_DEFAULT_BLOCK_B):
    """spk_embs: (B, E) -> (B, 1, E_out), matching the PyTorch module."""
    return _spk_enc_call(spk_embs, packed["w1"], packed["w_sq"], packed["bias"],
                         fold=int(packed["fold"]), block_b=int(block_b))


def init_params(key, input_size, output_size, dtype=jnp.float32):
    """Synthetic parameters shaped like the PyTorch module; conv weights are
    stored pre-transposed as (C_in, C_out) so each k=1 conv is a plain matmul."""
    ks = jax.random.split(key, 8)
    s_in = 1.0 / jnp.sqrt(input_size)
    s_out = 1.0 / jnp.sqrt(output_size)
    u = lambda k, shape, s: jax.random.uniform(k, shape, dtype, -s, s)
    return {
        "w1": u(ks[0], (input_size, output_size), s_in),
        "b1": u(ks[1], (output_size,), s_in),
        "wr1": u(ks[2], (output_size, output_size), s_out),
        "br1": u(ks[3], (output_size,), s_out),
        "wr2": u(ks[4], (output_size, output_size), s_out),
        "br2": u(ks[5], (output_size,), s_out),
        "w3": u(ks[6], (output_size, output_size), s_out),
        "b3": u(ks[7], (output_size,), s_out),
    }


def pack_params(p, *, dtype=None):
    """One-time packing into 3 kernel arrays + the (static int) lane-fold factor.

    * g = 128 // E_out batch rows are folded into the lane dimension, so every
      k=1 conv weight becomes a block-diagonal (g*C_in, g*C_out) matrix
      (jnp.kron) and every bias is lane-tiled to (g*E_out,).
    * dtype=jnp.bfloat16 casts the weights for the native bf16 MXU path on
      v6e/v7x; biases stay f32 (bias / residual math is f32 in-kernel anyway).
    """
    E_out = p["w1"].shape[1]
    g = 128 // E_out if (E_out < 128 and 128 % E_out == 0) else 1
    eye = jnp.eye(g, dtype=p["w1"].dtype)
    bd = (lambda w: jnp.kron(eye, w)) if g > 1 else (lambda w: w)
    w1 = bd(p["w1"])                                              # (g*E, g*E_out)
    w_sq = jnp.stack([bd(p["wr1"]), bd(p["wr2"]), bd(p["w3"])])   # (3, gEo, gEo)
    bias = jnp.tile(jnp.stack([p["b1"], p["br1"], p["br2"], p["b3"]]), (1, g))
    if dtype is not None:
        w1, w_sq = w1.astype(dtype), w_sq.astype(dtype)
    return {"w1": w1, "w_sq": w_sq,
            "bias": bias.astype(jnp.float32), "fold": g}


def _reference(spk_embs, p):
    """Pure-JAX reference of the same math (unfolded params)."""
    h0 = jnp.maximum(spk_embs @ p["w1"] + p["b1"][None, :], 0.0)
    r1 = jnp.maximum(h0 @ p["wr1"] + p["br1"][None, :], 0.0)
    res = h0 + (r1 @ p["wr2"] + p["br2"][None, :])
    h2 = jnp.maximum(res, 0.0)
    out = h2 @ p["w3"] + p["b3"][None, :]
    return out[:, None, :]


if __name__ == "__main__":
    key = jax.random.PRNGKey(0)
    k = jax.random.split(key, 8)

    def check(x, params, block_b=_DEFAULT_BLOCK_B):
        out = jax.block_until_ready(
            speaker_embedding_encoder(x, pack_params(params), block_b=block_b))
        ref = _reference(x, params)
        assert out.shape == ref.shape, (out.shape, ref.shape)
        assert jnp.allclose(out, ref, atol=1e-5, rtol=1e-5), \
            float(jnp.max(jnp.abs(out - ref)))

    # 1) Small shipped shape: fold g=4, single block, zero-copy (no padding).
    check(jax.random.normal(k[0], (4, 32), jnp.float32),
          init_params(k[1], 32, 32))

    # 2) Ragged batch: fold g=4, single block, pads 13 -> 16 rows.
    check(jax.random.normal(k[2], (13, 64), jnp.float32),
          init_params(k[3], 64, 32))

    # 3) Multi-step batch grid with folding (tile capped at 32 rows -> grid=2).
    check(jax.random.normal(k[4], (40, 64), jnp.float32),
          init_params(k[5], 64, 32), block_b=32)

    # 4) E_out that does not divide 128 -> no-fold fallback path.
    check(jax.random.normal(k[6], (10, 48), jnp.float32),
          init_params(k[7], 48, 48))

    print("KERNEL_OK")
</pallas_src>

<mosaic_0001>
module attributes {stable_mosaic.version = 11 : i64} {
  func.func @_spk_enc_kernel(%arg0: i32, %arg1: memref<1x128xf32, #tpu.memory_space<vmem>>, %arg2: memref<128x128xf32, #tpu.memory_space<vmem>>, %arg3: memref<3x128x128xf32, #tpu.memory_space<vmem>>, %arg4: memref<4x128xf32, #tpu.memory_space<vmem>>, %arg5: memref<1x128xf32, #tpu.memory_space<vmem>>) attributes {dimension_semantics = [#tpu.dimension_semantics<parallel>], iteration_bounds = array<i64: 1>, scalar_prefetch = 0 : i64, scratch_operands = 0 : i64, tpu.core_type = #tpu.core_type<tc>, window_params = [{transform_indices = @transform_0, window_bounds = array<i64: 1, 128>}, {pipeline_mode = #tpu.pipeline_mode<synchronous>, transform_indices = @transform_1, window_bounds = array<i64: 128, 128>}, {pipeline_mode = #tpu.pipeline_mode<synchronous>, transform_indices = @transform_2, window_bounds = array<i64: 3, 128, 128>}, {pipeline_mode = #tpu.pipeline_mode<synchronous>, transform_indices = @transform_3, window_bounds = array<i64: 4, 128>}, {transform_indices = @transform_4, window_bounds = array<i64: 1, 128>}]} {
    %c0 = arith.constant 0 : index
    %c0_0 = arith.constant 0 : index
    %0 = vector.load %arg1[%c0, %c0_0] : memref<1x128xf32, #tpu.memory_space<vmem>>, vector<1x128xf32>
    %c0_1 = arith.constant 0 : index
    %c0_2 = arith.constant 0 : index
    %1 = vector.load %arg4[%c0_1, %c0_2] : memref<4x128xf32, #tpu.memory_space<vmem>>, vector<4x128xf32>
    %c0_3 = arith.constant 0 : index
    %c0_4 = arith.constant 0 : index
    %2 = vector.load %arg2[%c0_3, %c0_4] : memref<128x128xf32, #tpu.memory_space<vmem>>, vector<128x128xf32>
    %cst = arith.constant dense<0.000000e+00> : vector<1x128xf32>
    %3 = tpu.matmul %0, %2, %cst {dimension_numbers = #tpu.dot_dimension_numbers<[1], [0], [0], [1], [0, 0, 1, 1], [], []>} : vector<1x128xf32>, vector<128x128xf32>, vector<1x128xf32> -> vector<1x128xf32>
    %4 = vector.extract_strided_slice %1 {offsets = [0, 0], sizes = [1, 128], strides = [1, 1]} : vector<4x128xf32> to vector<1x128xf32>
    %5 = arith.addf %3, %4 : vector<1x128xf32>
    %cst_5 = arith.constant 0.000000e+00 : f32
    %6 = vector.broadcast %cst_5 : f32 to vector<1x128xf32>
    %7 = arith.maximumf %5, %6 : vector<1x128xf32>
    %c0_6 = arith.constant 0 : index
    %c0_7 = arith.constant 0 : index
    %c0_8 = arith.constant 0 : index
    %8 = vector.load %arg3[%c0_6, %c0_7, %c0_8] : memref<3x128x128xf32, #tpu.memory_space<vmem>>, vector<1x128x128xf32>
    %9 = vector.shape_cast %8 : vector<1x128x128xf32> to vector<128x128xf32>
    %cst_9 = arith.constant dense<0.000000e+00> : vector<1x128xf32>
    %10 = tpu.matmul %7, %9, %cst_9 {dimension_numbers = #tpu.dot_dimension_numbers<[1], [0], [0], [1], [0, 0, 1, 1], [], []>} : vector<1x128xf32>, vector<128x128xf32>, vector<1x128xf32> -> vector<1x128xf32>
    %11 = vector.extract_strided_slice %1 {offsets = [1, 0], sizes = [1, 128], strides = [1, 1]} : vector<4x128xf32> to vector<1x128xf32>
    %12 = arith.addf %10, %11 : vector<1x128xf32>
    %cst_10 = arith.constant 0.000000e+00 : f32
    %13 = vector.broadcast %cst_10 : f32 to vector<1x128xf32>
    %14 = arith.maximumf %12, %13 : vector<1x128xf32>
    %c1 = arith.constant 1 : index
    %c0_11 = arith.constant 0 : index
    %c0_12 = arith.constant 0 : index
    %15 = vector.load %arg3[%c1, %c0_11, %c0_12] : memref<3x128x128xf32, #tpu.memory_space<vmem>>, vector<1x128x128xf32>
    %16 = vector.shape_cast %15 : vector<1x128x128xf32> to vector<128x128xf32>
    %cst_13 = arith.constant dense<0.000000e+00> : vector<1x128xf32>
    %17 = tpu.matmul %14, %16, %cst_13 {dimension_numbers = #tpu.dot_dimension_numbers<[1], [0], [0], [1], [0, 0, 1, 1], [], []>} : vector<1x128xf32>, vector<128x128xf32>, vector<1x128xf32> -> vector<1x128xf32>
    %18 = vector.extract_strided_slice %1 {offsets = [2, 0], sizes = [1, 128], strides = [1, 1]} : vector<4x128xf32> to vector<1x128xf32>
    %19 = arith.addf %17, %18 : vector<1x128xf32>
    %20 = arith.addf %7, %19 : vector<1x128xf32>
    %cst_14 = arith.constant 0.000000e+00 : f32
    %21 = vector.broadcast %cst_14 : f32 to vector<1x128xf32>
    %22 = arith.maximumf %20, %21 : vector<1x128xf32>
    %c2 = arith.constant 2 : index
    %c0_15 = arith.constant 0 : index
    %c0_16 = arith.constant 0 : index
    %23 = vector.load %arg3[%c2, %c0_15, %c0_16] : memref<3x128x128xf32, #tpu.memory_space<vmem>>, vector<1x128x128xf32>
    %24 = vector.shape_cast %23 : vector<1x128x128xf32> to vector<128x128xf32>
    %cst_17 = arith.constant dense<0.000000e+00> : vector<1x128xf32>
    %25 = tpu.matmul %22, %24, %cst_17 {dimension_numbers = #tpu.dot_dimension_numbers<[1], [0], [0], [1], [0, 0, 1, 1], [], []>} : vector<1x128xf32>, vector<128x128xf32>, vector<1x128xf32> -> vector<1x128xf32>
    %26 = vector.extract_strided_slice %1 {offsets = [3, 0], sizes = [1, 128], strides = [1, 1]} : vector<4x128xf32> to vector<1x128xf32>
    %27 = arith.addf %25, %26 : vector<1x128xf32>
    %c0_18 = arith.constant 0 : index
    %c0_19 = arith.constant 0 : index
    %28 = vector.load %arg5[%c0_18, %c0_19] : memref<1x128xf32, #tpu.memory_space<vmem>>, vector<1x128xf32>
    tpu.vector_store %arg5[%c0_18, %c0_19], %27 {strides = array<i32>} : memref<1x128xf32, #tpu.memory_space<vmem>>, vector<1x128xf32>,
    return
  }
  func.func @transform_0(%arg0: i32) -> (i32, i32) {
    %c0_i32 = arith.constant 0 : i32
    %c0_i32_0 = arith.constant 0 : i32
    return %arg0, %c0_i32 : i32, i32
  }
  func.func @transform_1(%arg0: i32) -> (i32, i32) {
    %c0_i32 = arith.constant 0 : i32
    %c0_i32_0 = arith.constant 0 : i32
    %c0_i32_1 = arith.constant 0 : i32
    return %c0_i32, %c0_i32_0 : i32, i32
  }
  func.func @transform_2(%arg0: i32) -> (i32, i32, i32) {
    %c0_i32 = arith.constant 0 : i32
    %c0_i32_0 = arith.constant 0 : i32
    %c0_i32_1 = arith.constant 0 : i32
    %c0_i32_2 = arith.constant 0 : i32
    return %c0_i32, %c0_i32_0, %c0_i32_1 : i32, i32, i32
  }
  func.func @transform_3(%arg0: i32) -> (i32, i32) {
    %c0_i32 = arith.constant 0 : i32
    %c0_i32_0 = arith.constant 0 : i32
    %c0_i32_1 = arith.constant 0 : i32
    return %c0_i32, %c0_i32_0 : i32, i32
  }
  func.func @transform_4(%arg0: i32) -> (i32, i32) {
    %c0_i32 = arith.constant 0 : i32
    %c0_i32_0 = arith.constant 0 : i32
    return %arg0, %c0_i32 : i32, i32
  }
}

</mosaic_0001>

<bundles_post_ra>
// kernel: _spk_enc_call.1
= control target key start
LH: loop header
LB: loop body
LE: loop exit
PB: predicated region body
PF: predicated region fallthrough
CT: control target
= control target key end

     0   :  { %9 = vsyncpa [#allocation3], 0  ;;  %s315_s0 = inlined_call_operand.vmem [shape: f32[1,128], index: 0, kind: input, shape index: {}]   ;;  %s316_s1 = inlined_call_operand.hbm [shape: f32[128,128], index: 1, kind: input, shape index: {}]   ;;  %s317_s2 = inlined_call_operand.hbm [shape: f32[3,128,128], index: 2, kind: input, shape index: {}]   ;;  %s318_s3 = inlined_call_operand.vmem [shape: f32[4,128], index: 3, kind: input, shape index: {}]   ;;  %s319_s4 = inlined_call_operand.vmem [shape: f32[1,128], index: 4, kind: output, shape index: {}]  }
   0x1   :  { %s17_s17 = sshll.u32 %s316_s1, 4  ;;  %s18_s17 = int_to_ptr.hbm [resolvable:$true] %s17_s17 }
   0x2   :  { %10 = vsyncpa [#allocation5], 0  ;;  %s271_s18 = smov [#allocation2]   ;;  %s30_s22 = sshll.u32 %s317_s2, 4  ;;  %s31_s22 = int_to_ptr.hbm [resolvable:$true] %s30_s22 }
   0x3   :  { %s19_s19 = sshll.u32 %s271_s18, 4  ;;  %s272_s23 = smov 128   ;;  %s20_s19 = int_to_ptr.vmem [resolvable:$true] %s19_s19 }
   0x4   :  { %s273_s24 = smov 8   ;;  %s274_s25 = smov [#allocation4]  }
   0x5   :  { %25 = dma.hbm_to_vmem [thread:$0]  %s18_s17, 2048, %s20_s19, [#allocation3], %s272_s23, %s272_s23, %s273_s24  }
   0x6   :  { %s32_s26 = sshll.u32 %s274_s25, 4  ;;  %s33_s26 = int_to_ptr.vmem [resolvable:$true] %s32_s26 }
   0x7   :  { %38 = dma.hbm_to_vmem [thread:$0]  %s31_s22, 6144, %s33_s26, [#allocation5], %s272_s23, %s272_s23, %s273_s24  }
   0x8   :  { %267 = dma.done.wait [#allocation3], 2048  }
   0x9   :  { %268 = vsyncadd [#allocation3], 4294965248 }
   0xa   :  { %269 = dma.done.wait [#allocation5], 6144  }
   0xb   :  { %270 = vsyncadd [#allocation5], 4294961152  ;;  %v66_v0 = vld [vmem:[#allocation2 + $0x78] sm:$0xff]  ;;  %v65_v1 = vld [vmem:[#allocation2 + $0x70] sm:$0xff] }
   0xc   :  { %67 = vmatpush.msra.mxu0 %v66_v0  ;;  %v64_v2 = vld [vmem:[#allocation2 + $0x68] sm:$0xff]  ;;  %v63_v3 = vld [vmem:[#allocation2 + $0x60] sm:$0xff]  ;;  %v103_v4 = vld [vmem:[#allocation4 + $0x78] sm:$0xff] }
   0xd   :  { %v62_v5 = vld [vmem:[#allocation2 + $0x58] sm:$0xff]  ;;  %107 = vmatpush.msra.mxu1 %v103_v4  ;;  %v102_v6 = vld [vmem:[#allocation4 + $0x70] sm:$0xff]  ;;  %v101_v7 = vld [vmem:[#allocation4 + $0x68] sm:$0xff] }
   0xe   :  { %68 = vmatpush.msra.mxu0 %v65_v1  ;;  %v61_v8 = vld [vmem:[#allocation2 + $0x50] sm:$0xff]  ;;  %v100_v9 = vld [vmem:[#allocation4 + $0x60] sm:$0xff]  ;;  %v60_v10 = vld [vmem:[#allocation2 + $0x48] sm:$0xff] }
   0xf   :  { %108 = vmatpush.msra.mxu1 %v102_v6  ;;  %v99_v11 = vld [vmem:[#allocation4 + $0x58] sm:$0xff]  ;;  %v59_v12 = vld [vmem:[#allocation2 + $0x40] sm:$0xff]  ;;  %v98_v13 = vld [vmem:[#allocation4 + $0x50] sm:$0xff] }
  0x10   :  { %69 = vmatpush.msra.mxu0 %v64_v2  ;;  %v58_v14 = vld [vmem:[#allocation2 + $0x38] sm:$0xff]  ;;  %v97_v15 = vld [vmem:[#allocation4 + $0x48] sm:$0xff]  ;;  %v57_v16 = vld [vmem:[#allocation2 + $0x30] sm:$0xff] }
  0x11   :  { %109 = vmatpush.msra.mxu1 %v101_v7  ;;  %v96_v17 = vld [vmem:[#allocation4 + $0x40] sm:$0xff]  ;;  %v56_v18 = vld [vmem:[#allocation2 + $0x28] sm:$0xff]  ;;  %v95_v19 = vld [vmem:[#allocation4 + $0x38] sm:$0xff] }
  0x12   :  { %70 = vmatpush.msra.mxu0 %v63_v3  ;;  %v55_v20 = vld [vmem:[#allocation2 + $0x20] sm:$0xff]  ;;  %v94_v21 = vld [vmem:[#allocation4 + $0x30] sm:$0xff]  ;;  %v54_v22 = vld [vmem:[#allocation2 + $0x18] sm:$0xff] }
  0x13   :  { %110 = vmatpush.msra.mxu1 %v100_v9  ;;  %v93_v23 = vld [vmem:[#allocation4 + $0x28] sm:$0xff]  ;;  %v53_v24 = vld [vmem:[#allocation2 + $0x10] sm:$0xff]  ;;  %v92_v25 = vld [vmem:[#allocation4 + $0x20] sm:$0xff] }
  0x14   :  { %71 = vmatpush.msra.mxu0 %v62_v5  ;;  %v52_v26 = vld [vmem:[#allocation2 + $0x8] sm:$0xff]  ;;  %v91_v27 = vld [vmem:[#allocation4 + $0x18] sm:$0xff]  ;;  %v51_v28 = vld [vmem:[#allocation2] sm:$0xff] }
  0x15   :  { %111 = vmatpush.msra.mxu1 %v99_v11  ;;  %v49_v29 = vld [vmem:[%s315_s0] sm:$0x1]  ;;  %v90_v30 = vld [vmem:[#allocation4 + $0x10] sm:$0xff]  ;;  %v89_v31 = vld [vmem:[#allocation4 + $0x8] sm:$0xff] }
  0x16   :  { %72 = vmatpush.msra.mxu0 %v61_v8  ;;  %v88_v32 = vld [vmem:[#allocation4] sm:$0xff]  ;;  %v144_v33 = vld [vmem:[#allocation4 + $0xf8] sm:$0xff]  ;;  %v143_v34 = vld [vmem:[#allocation4 + $0xf0] sm:$0xff] }
  0x17   :  { %112 = vmatpush.msra.mxu1 %v98_v13  ;;  %147 = vmatpush.msra.mxu2 %v144_v33  ;;  %v142_v35 = vld [vmem:[#allocation4 + $0xe8] sm:$0xff]  ;;  %v141_v36 = vld [vmem:[#allocation4 + $0xe0] sm:$0xff]  ;;  %v140_v37 = vld [vmem:[#allocation4 + $0xd8] sm:$0xff] }
  0x18   :  { %73 = vmatpush.msra.mxu0 %v60_v10  ;;  %v139_v38 = vld [vmem:[#allocation4 + $0xd0] sm:$0xff]  ;;  %v138_v39 = vld [vmem:[#allocation4 + $0xc8] sm:$0xff]  ;;  %v137_v40 = vld [vmem:[#allocation4 + $0xc0] sm:$0xff] }
  0x19   :  { %113 = vmatpush.msra.mxu1 %v97_v15  ;;  %148 = vmatpush.msra.mxu2 %v143_v34  ;;  %v136_v41 = vld [vmem:[#allocation4 + $0xb8] sm:$0xff]  ;;  %v135_v42 = vld [vmem:[#allocation4 + $0xb0] sm:$0xff]  ;;  %v134_v43 = vld [vmem:[#allocation4 + $0xa8] sm:$0xff] }
  0x1a   :  { %74 = vmatpush.msra.mxu0 %v59_v12  ;;  %v133_v44 = vld [vmem:[#allocation4 + $0xa0] sm:$0xff]  ;;  %v132_v45 = vld [vmem:[#allocation4 + $0x98] sm:$0xff]  ;;  %v131_v50 = vld [vmem:[#allocation4 + $0x90] sm:$0xff] }
  0x1b   :  { %114 = vmatpush.msra.mxu1 %v96_v17  ;;  %149 = vmatpush.msra.mxu2 %v142_v35  ;;  %v50_v46 = vld [vmem:[%s318_s3] sm:$0xf]  ;;  %v130_v51 = vld [vmem:[#allocation4 + $0x88] sm:$0xff]  ;;  %v185_v53 = vld [vmem:[#allocation4 + $0x178] sm:$0xff] }
  0x1c   :  { %75 = vmatpush.msra.mxu0 %v58_v14  ;;  %v129_v52 = vld [vmem:[#allocation4 + $0x80] sm:$0xff]  ;;  %v184_v54 = vld [vmem:[#allocation4 + $0x170] sm:$0xff]  ;;  %188 = vmatpush.msra.mxu3 %v185_v53  ;;  %v183_v55 = vld [vmem:[#allocation4 + $0x168] sm:$0xff]  ;;  %v105_v1 = vrot.slane %v50_v46, 1  ;;  %v145_v9 = vrot.slane %v50_v46, 2  ;;  %v186_v14 = vrot.slane %v50_v46, 3 }
  0x1d   :  { %115 = vmatpush.msra.mxu1 %v95_v19  ;;  %150 = vmatpush.msra.mxu2 %v141_v36  ;;  %v182_v56 = vld [vmem:[#allocation4 + $0x160] sm:$0xff]  ;;  %v181_v57 = vld [vmem:[#allocation4 + $0x158] sm:$0xff]  ;;  %v180_v58 = vld [vmem:[#allocation4 + $0x150] sm:$0xff] }
  0x1e   :  { %76 = vmatpush.msra.mxu0 %v57_v16  ;;  %189 = vmatpush.msra.mxu3 %v184_v54  ;;  %v179_v59 = vld [vmem:[#allocation4 + $0x148] sm:$0xff]  ;;  %v178_v60 = vld [vmem:[#allocation4 + $0x140] sm:$0xff]  ;;  %v177_v61 = vld [vmem:[#allocation4 + $0x138] sm:$0xff] }
  0x1f   :  { %116 = vmatpush.msra.mxu1 %v94_v21  ;;  %151 = vmatpush.msra.mxu2 %v140_v37  ;;  %v176_v62 = vld [vmem:[#allocation4 + $0x130] sm:$0xff]  ;;  %v175_v63 = vld [vmem:[#allocation4 + $0x128] sm:$0xff]  ;;  %v174_v0 = vld [vmem:[#allocation4 + $0x120] sm:$0xff] }
  0x20   :  { %77 = vmatpush.msra.mxu0 %v56_v18  ;;  %190 = vmatpush.msra.mxu3 %v183_v55  ;;  %v173_v5 = vld [vmem:[#allocation4 + $0x118] sm:$0xff]  ;;  %v172_v6 = vld [vmem:[#allocation4 + $0x110] sm:$0xff]  ;;  %v171_v7 = vld [vmem:[#allocation4 + $0x108] sm:$0xff] }
  0x21   :  { %117 = vmatpush.msra.mxu1 %v93_v23  ;;  %152 = vmatpush.msra.mxu2 %v139_v38  ;;  %v170_v8 = vld [vmem:[#allocation4 + $0x100] sm:$0xff] }
  0x22   :  { %78 = vmatpush.msra.mxu0 %v55_v20  ;;  %191 = vmatpush.msra.mxu3 %v182_v56 }
  0x23   :  { %118 = vmatpush.msra.mxu1 %v92_v25  ;;  %153 = vmatpush.msra.mxu2 %v138_v39 }
  0x24   :  { %79 = vmatpush.msra.mxu0 %v54_v22  ;;  %192 = vmatpush.msra.mxu3 %v181_v57 }
  0x25   :  { %119 = vmatpush.msra.mxu1 %v91_v27  ;;  %154 = vmatpush.msra.mxu2 %v137_v40 }
  0x26   :  { %80 = vmatpush.msra.mxu0 %v53_v24  ;;  %193 = vmatpush.msra.mxu3 %v180_v58 }
  0x27   :  { %120 = vmatpush.msra.mxu1 %v90_v30  ;;  %155 = vmatpush.msra.mxu2 %v136_v41 }
  0x28   :  { %81 = vmatpush.msra.mxu0 %v52_v26  ;;  %194 = vmatpush.msra.mxu3 %v179_v59 }
  0x29   :  { %121 = vmatpush.msra.mxu1 %v89_v31  ;;  %156 = vmatpush.msra.mxu2 %v135_v42 }
  0x2a   :  { %82 = vmatpush.msra.mxu0 %v51_v28  ;;  %195 = vmatpush.msra.mxu3 %v178_v60 }
  0x2b   :  { %83 = vmatmul.f32.vlgmr.msra.gmra.mxu0 %v49_v29  ;;  %122 = vmatpush.msra.mxu1 %v88_v32 }
  0x2c   :  { %157 = vmatpush.msra.mxu2 %v134_v43  ;;  %196 = vmatpush.msra.mxu3 %v177_v61 }
  0x2e   :  { %158 = vmatpush.msra.mxu2 %v133_v44  ;;  %197 = vmatpush.msra.mxu3 %v176_v62 }
  0x30   :  { %159 = vmatpush.msra.mxu2 %v132_v45  ;;  %198 = vmatpush.msra.mxu3 %v175_v63 }
  0x32   :  { %160 = vmatpush.msra.mxu2 %v131_v50  ;;  %199 = vmatpush.msra.mxu3 %v174_v0 }
  0x34   :  { %161 = vmatpush.msra.mxu2 %v130_v51  ;;  %200 = vmatpush.msra.mxu3 %v173_v5 }
  0x36   :  { %162 = vmatpush.msra.mxu2 %v129_v52  ;;  %201 = vmatpush.msra.mxu3 %v172_v6 }
  0x38   :  { %202 = vmatpush.msra.mxu3 %v171_v7 }
  0x3a   :  { %203 = vmatpush.msra.mxu3 %v170_v8 }
  0xa8   :  { %v84_v47 = vpop.f32.mrf.mxu0 }
  0xa9   :  { %v85_v48 = vadd.f32 %v84_v47, %v50_v46 }
  0xab   :  { %v87_v49 = vmax.f32 %v85_v48, 0.0 }
  0xad   :  { %123 = vmatmul.f32.vlgmr.msra.gmra.mxu1 %v87_v49 }
 0x12a   :  { %v124_v2 = vpop.f32.mrf.mxu1 }
 0x12b   :  { %v125_v3 = vadd.f32 %v124_v2, %v105_v1 }
 0x12d   :  { %v127_v4 = vmax.f32 %v125_v3, 0.0 }
 0x12f   :  { %163 = vmatmul.f32.vlgmr.msra.gmra.mxu2 %v127_v4 }
 0x1b2   :  { %v164_v10 = vpop.f32.mrf.mxu2 }
 0x1b3   :  { %v165_v11 = vadd.f32 %v164_v10, %v145_v9 }
 0x1b5   :  { %v167_v12 = vadd.f32 %v165_v11, %v87_v49 }
 0x1b7   :  { %v168_v13 = vmax.f32 %v167_v12, 0.0 }
 0x1b9   :  { %204 = vmatmul.f32.vlgmr.msra.gmra.mxu3 %v168_v13 }
 0x23c   :  { %v205_v15 = vpop.f32.mrf.mxu3 }
 0x23d   :  { %v206_v16 = vadd.f32 %v205_v15, %v186_v14 }
 0x23f   :  { %208 = vst [vmem:[%s319_s4] sm:$0x1] %v206_v16 }
 0x240   :  { %213 = vsyncpa [#allocation3], 1 }
 0x241   :  { %214 = vsyncpa [#allocation5], 1 }

</bundles_post_ra>
